<compile_context>
chip_gen: v7x
topology: tpu7x:2x2x1
jax: 0.10.0
libtpu: 0.0.40
codegen_flags: <defaults>
</compile_context>

<pallas_src>
import functools

import numpy as np
import jax
import jax.numpy as jnp
from jax.experimental import pallas as pl
from jax.experimental.pallas import tpu as pltpu


# ---------------------------------------------------------------------------
# Overcomplete DCT dictionary (deterministic, matches the PyTorch odctdict)
# ---------------------------------------------------------------------------
def odctdict(n, L):
    D = np.zeros((n, L))
    D[:, 0] = 1.0 / np.sqrt(n) * np.ones(n)
    for k in range(1, L):
        v = np.cos(np.arange(n) * np.pi * k / L).T
        v = v - np.mean(v)
        D[:, k] = v / np.linalg.norm(v, 2)
    return D


# ---------------------------------------------------------------------------
# Pallas kernel: fused SDM_VAE forward
#   h     = tanh(x @ W_xz + b_xz)                     (encoder MLP, dropout=0)
#   heads = h @ [W_mean | W_logvar] + [b_mean|b_logvar]   (fused, 128 lanes)
#   alpha = mean + eps * exp(0.5 * logvar)            (reparameterization)
#   h2    = tanh(alpha @ (D.T @ W_zx) + b_zx)         (dict folded into decoder)
#   y     = exp(h2 @ W_gen_pad + b_gen_pad)           (128-lane padded store)
# ---------------------------------------------------------------------------
def sdm_vae_kernel(x_ref, eps_ref,
                   w_xz_ref, b_xz_ref,
                   w_heads_ref, b_heads_ref,
                   w_dec_ref, b_dec_ref,
                   w_gen_ref, b_gen_ref,
                   y_ref, *, dictsize):
    x = x_ref[...]

    # Encoder MLP: Linear(x_dim -> hidden) + tanh  (dropout p=0 -> identity)
    h = jnp.tanh(
        jnp.dot(x, w_xz_ref[...], preferred_element_type=jnp.float32)
        + b_xz_ref[...]
    )

    # Fused mean/logvar heads: one lane-dense (hidden, 2*dictsize) matmul.
    heads = (jnp.dot(h, w_heads_ref[...], preferred_element_type=jnp.float32)
             + b_heads_ref[...])
    alpha_mean = heads[:, :dictsize]
    alpha_logvar = heads[:, dictsize:]

    # Reparameterization: alpha = mean + eps * exp(0.5 * logvar)
    alpha = alpha_mean + eps_ref[...] * jnp.exp(0.5 * alpha_logvar)

    # Decoder with the DCT dictionary folded in: tanh(alpha @ (D.T @ W_zx) + b)
    h2 = jnp.tanh(
        jnp.dot(alpha, w_dec_ref[...], preferred_element_type=jnp.float32)
        + b_dec_ref[...]
    )

    # gen_logvar (zero-padded to 128 lanes) + exp; padded lanes are discarded
    # by the wrapper slice.
    log_y = (jnp.dot(h2, w_gen_ref[...], preferred_element_type=jnp.float32)
             + b_gen_ref[...])
    y_ref[...] = jnp.exp(log_y)


def sdm_vae_forward(x, eps, params, *, tb=None):
    """x: (B, x_dim) f32, eps: (B, dictsize) f32, params: dict of arrays."""
    B, x_dim = x.shape
    hidden = params["w_xz"].shape[1]
    dictsize = params["w_mean"].shape[1]

    # --- algebraic fusions done once in the wrapper (constants) -------------
    # Fused mean|logvar head: (hidden, 2*dictsize) -> lane-dense 128 for the
    # default dictsize=64.
    w_heads = jnp.concatenate([params["w_mean"], params["w_logvar"]], axis=1)
    b_heads = jnp.concatenate([params["b_mean"], params["b_logvar"]], axis=1)
    # Fold dictionary into decoder weight: (dictsize, z_dim) @ (z_dim, hidden)
    w_dec = jnp.dot(params["d_t"], params["w_zx"],
                    preferred_element_type=jnp.float32)
    b_dec = params["b_zx"]
    # Pad the output head to a lane-dense multiple of 128 (unmasked vst).
    y_pad = pl.cdiv(x_dim, 128) * 128
    w_gen = jnp.pad(params["w_gen"], ((0, 0), (0, y_pad - x_dim)))
    b_gen = jnp.pad(params["b_gen"], ((0, 0), (0, y_pad - x_dim)))

    # --- batch tiling --------------------------------------------------------
    if tb is None:
        tb = min(B, 512)                       # multiple of 8 for f32 sublane
    assert tb % 8 == 0 or tb == B, "batch tile must be a sublane multiple"
    assert B % tb == 0, "batch must be divisible by the batch tile"
    grid = (B // tb,)

    def batch_map(i):
        return (i, 0)

    def resident_map(i):              # weights/biases stay in VMEM across grid
        return (0, 0)

    in_specs = [
        pl.BlockSpec((tb, x_dim), batch_map),                 # x
        pl.BlockSpec((tb, dictsize), batch_map),              # eps
        pl.BlockSpec((x_dim, hidden), resident_map),          # w_xz
        pl.BlockSpec((1, hidden), resident_map),              # b_xz
        pl.BlockSpec((hidden, 2 * dictsize), resident_map),   # w_heads
        pl.BlockSpec((1, 2 * dictsize), resident_map),        # b_heads
        pl.BlockSpec((dictsize, hidden), resident_map),       # w_dec
        pl.BlockSpec((1, hidden), resident_map),              # b_dec
        pl.BlockSpec((hidden, y_pad), resident_map),          # w_gen (padded)
        pl.BlockSpec((1, y_pad), resident_map),               # b_gen (padded)
    ]
    out_specs = pl.BlockSpec((tb, y_pad), batch_map)

    # Advisory cost estimate so XLA overlaps this call sensibly.
    flops = 2 * B * (x_dim * hidden + hidden * 2 * dictsize
                     + dictsize * hidden + hidden * y_pad)
    transcendentals = B * (hidden + dictsize + hidden + y_pad)
    weights_bytes = 4 * (x_dim * hidden + hidden + hidden * 2 * dictsize
                         + 2 * dictsize + dictsize * hidden + hidden
                         + hidden * y_pad + y_pad)
    bytes_accessed = 4 * B * (x_dim + dictsize + y_pad) + weights_bytes

    y_full = pl.pallas_call(
        functools.partial(sdm_vae_kernel, dictsize=dictsize),
        out_shape=jax.ShapeDtypeStruct((B, y_pad), jnp.float32),
        grid=grid,
        in_specs=in_specs,
        out_specs=out_specs,
        compiler_params=pltpu.CompilerParams(
            dimension_semantics=("parallel",)),
        cost_estimate=pl.CostEstimate(
            flops=flops,
            transcendentals=transcendentals,
            bytes_accessed=bytes_accessed),
    )(x, eps,
      params["w_xz"], params["b_xz"],
      w_heads, b_heads,
      w_dec, b_dec,
      w_gen, b_gen)

    return y_full[:, :x_dim]


# ---------------------------------------------------------------------------
# Parameter construction (deterministic, shapes from SDM_VAE.__init__/build)
# ---------------------------------------------------------------------------
def make_params(key, x_dim, hidden, z_dim, dictsize):
    ks = jax.random.split(key, 10)

    def linear(kw, kb, fan_in, fan_out):
        # PyTorch nn.Linear default init: U(-1/sqrt(fan_in), 1/sqrt(fan_in))
        bound = 1.0 / np.sqrt(fan_in)
        w = jax.random.uniform(kw, (fan_in, fan_out), jnp.float32, -bound, bound)
        b = jax.random.uniform(kb, (1, fan_out), jnp.float32, -bound, bound)
        return w, b

    w_xz, b_xz = linear(ks[0], ks[1], x_dim, hidden)              # mlp_x_z.linear0
    w_mean, b_mean = linear(ks[2], ks[3], hidden, dictsize)       # inf_mean_alpha
    w_logvar, b_logvar = linear(ks[4], ks[5], hidden, dictsize)   # inf_logvar_alpha
    w_zx, b_zx = linear(ks[6], ks[7], z_dim, hidden)              # mlp_z_x.linear0
    w_gen, b_gen = linear(ks[8], ks[9], hidden, x_dim)            # gen_logvar

    D = jnp.asarray(odctdict(z_dim, dictsize).astype(np.float32))  # (z_dim, dictsize)
    return dict(
        w_xz=w_xz, b_xz=b_xz,
        w_mean=w_mean, b_mean=b_mean,
        w_logvar=w_logvar, b_logvar=b_logvar,
        d_t=D.T,                                  # (dictsize, z_dim)
        w_zx=w_zx, b_zx=b_zx,
        w_gen=w_gen, b_gen=b_gen,
    )


def reference_forward(x, eps, p):
    """Pure-JAX reference of the un-fused forward (for correctness check)."""
    h = jnp.tanh(x @ p["w_xz"] + p["b_xz"])
    mean = h @ p["w_mean"] + p["b_mean"]
    logvar = h @ p["w_logvar"] + p["b_logvar"]
    alpha = mean + eps * jnp.exp(0.5 * logvar)
    z = alpha @ p["d_t"]
    h2 = jnp.tanh(z @ p["w_zx"] + p["b_zx"])
    return jnp.exp(h2 @ p["w_gen"] + p["b_gen"])


if __name__ == "__main__":
    # Small shapes consistent with the module's forward:
    #   x: (batch, x_dim), z_dim=16, dense_x_z=[32] (hidden), dictsize=64
    B, X_DIM, HIDDEN, Z_DIM, DICTSIZE = 8, 32, 32, 16, 64

    key = jax.random.PRNGKey(0)
    k_params, k_x, k_eps = jax.random.split(key, 3)

    params = make_params(k_params, X_DIM, HIDDEN, Z_DIM, DICTSIZE)
    x = jax.random.normal(k_x, (B, X_DIM), dtype=jnp.float32)
    # eps corresponds to torch.randn_like(std) in reparameterization; supplied
    # as an input so the kernel is deterministic.
    eps = jax.random.normal(k_eps, (B, DICTSIZE), dtype=jnp.float32)

    y = sdm_vae_forward(x, eps, params)
    y = jax.block_until_ready(y)

    y_ref = reference_forward(x, eps, params)
    assert y.shape == (B, X_DIM)
    assert jnp.allclose(y, y_ref, rtol=1e-5, atol=1e-5), "mismatch vs reference"

    # .squeeze() in the PyTorch forward is a no-op here (no size-1 dims).
    # TODO(synk): training-time loss terms (get_loss) and dropout_p>0 are not
    # part of the inference forward and are not implemented in-kernel.
    print("KERNEL_OK")
</pallas_src>

<mosaic_0001>
module attributes {stable_mosaic.version = 11 : i64} {
  func.func @sdm_vae_kernel(%arg0: i32, %arg1: memref<8x32xf32, #tpu.memory_space<vmem>>, %arg2: memref<8x64xf32, #tpu.memory_space<vmem>>, %arg3: memref<32x32xf32, #tpu.memory_space<vmem>>, %arg4: memref<1x32xf32, #tpu.memory_space<vmem>>, %arg5: memref<32x128xf32, #tpu.memory_space<vmem>>, %arg6: memref<1x128xf32, #tpu.memory_space<vmem>>, %arg7: memref<64x32xf32, #tpu.memory_space<vmem>>, %arg8: memref<1x32xf32, #tpu.memory_space<vmem>>, %arg9: memref<32x128xf32, #tpu.memory_space<vmem>>, %arg10: memref<1x128xf32, #tpu.memory_space<vmem>>, %arg11: memref<8x128xf32, #tpu.memory_space<vmem>>) attributes {dimension_semantics = [#tpu.dimension_semantics<parallel>], iteration_bounds = array<i64: 1>, scalar_prefetch = 0 : i64, scratch_operands = 0 : i64, tpu.core_type = #tpu.core_type<tc>, window_params = [{transform_indices = @transform_0, window_bounds = array<i64: 8, 32>}, {transform_indices = @transform_1, window_bounds = array<i64: 8, 64>}, {pipeline_mode = #tpu.pipeline_mode<synchronous>, transform_indices = @transform_2, window_bounds = array<i64: 32, 32>}, {pipeline_mode = #tpu.pipeline_mode<synchronous>, transform_indices = @transform_3, window_bounds = array<i64: 1, 32>}, {pipeline_mode = #tpu.pipeline_mode<synchronous>, transform_indices = @transform_4, window_bounds = array<i64: 32, 128>}, {pipeline_mode = #tpu.pipeline_mode<synchronous>, transform_indices = @transform_5, window_bounds = array<i64: 1, 128>}, {pipeline_mode = #tpu.pipeline_mode<synchronous>, transform_indices = @transform_6, window_bounds = array<i64: 64, 32>}, {pipeline_mode = #tpu.pipeline_mode<synchronous>, transform_indices = @transform_7, window_bounds = array<i64: 1, 32>}, {pipeline_mode = #tpu.pipeline_mode<synchronous>, transform_indices = @transform_8, window_bounds = array<i64: 32, 128>}, {pipeline_mode = #tpu.pipeline_mode<synchronous>, transform_indices = @transform_9, window_bounds = array<i64: 1, 128>}, {transform_indices = @transform_10, window_bounds = array<i64: 8, 128>}]} {
    %c0 = arith.constant 0 : index
    %c0_0 = arith.constant 0 : index
    %0 = vector.load %arg1[%c0, %c0_0] : memref<8x32xf32, #tpu.memory_space<vmem>>, vector<8x32xf32>
    %c0_1 = arith.constant 0 : index
    %c0_2 = arith.constant 0 : index
    %1 = vector.load %arg3[%c0_1, %c0_2] : memref<32x32xf32, #tpu.memory_space<vmem>>, vector<32x32xf32>
    %cst = arith.constant dense<0.000000e+00> : vector<8x32xf32>
    %2 = tpu.matmul %0, %1, %cst {dimension_numbers = #tpu.dot_dimension_numbers<[1], [0], [0], [1], [0, 0, 1, 1], [], []>} : vector<8x32xf32>, vector<32x32xf32>, vector<8x32xf32> -> vector<8x32xf32>
    %c0_3 = arith.constant 0 : index
    %c0_4 = arith.constant 0 : index
    %3 = vector.load %arg4[%c0_3, %c0_4] : memref<1x32xf32, #tpu.memory_space<vmem>>, vector<1x32xf32>
    %4 = vector.broadcast %3 : vector<1x32xf32> to vector<8x32xf32>
    %5 = arith.addf %2, %4 : vector<8x32xf32>
    %6 = math.tanh %5 : vector<8x32xf32>
    %c0_5 = arith.constant 0 : index
    %c0_6 = arith.constant 0 : index
    %7 = vector.load %arg5[%c0_5, %c0_6] : memref<32x128xf32, #tpu.memory_space<vmem>>, vector<32x128xf32>
    %cst_7 = arith.constant dense<0.000000e+00> : vector<8x128xf32>
    %8 = tpu.matmul %6, %7, %cst_7 {dimension_numbers = #tpu.dot_dimension_numbers<[1], [0], [0], [1], [0, 0, 1, 1], [], []>} : vector<8x32xf32>, vector<32x128xf32>, vector<8x128xf32> -> vector<8x128xf32>
    %c0_8 = arith.constant 0 : index
    %c0_9 = arith.constant 0 : index
    %9 = vector.load %arg6[%c0_8, %c0_9] : memref<1x128xf32, #tpu.memory_space<vmem>>, vector<1x128xf32>
    %10 = vector.broadcast %9 : vector<1x128xf32> to vector<8x128xf32>
    %11 = arith.addf %8, %10 : vector<8x128xf32>
    %12 = vector.extract_strided_slice %11 {offsets = [0, 0], sizes = [8, 64], strides = [1, 1]} : vector<8x128xf32> to vector<8x64xf32>
    %13 = vector.extract_strided_slice %11 {offsets = [0, 64], sizes = [8, 64], strides = [1, 1]} : vector<8x128xf32> to vector<8x64xf32>
    %c0_10 = arith.constant 0 : index
    %c0_11 = arith.constant 0 : index
    %14 = vector.load %arg2[%c0_10, %c0_11] : memref<8x64xf32, #tpu.memory_space<vmem>>, vector<8x64xf32>
    %cst_12 = arith.constant 5.000000e-01 : f32
    %15 = vector.broadcast %cst_12 : f32 to vector<8x64xf32>
    %16 = arith.mulf %15, %13 : vector<8x64xf32>
    %17 = math.exp %16 : vector<8x64xf32>
    %18 = arith.mulf %14, %17 : vector<8x64xf32>
    %19 = arith.addf %12, %18 : vector<8x64xf32>
    %c0_13 = arith.constant 0 : index
    %c0_14 = arith.constant 0 : index
    %20 = vector.load %arg7[%c0_13, %c0_14] : memref<64x32xf32, #tpu.memory_space<vmem>>, vector<64x32xf32>
    %cst_15 = arith.constant dense<0.000000e+00> : vector<8x32xf32>
    %21 = tpu.matmul %19, %20, %cst_15 {dimension_numbers = #tpu.dot_dimension_numbers<[1], [0], [0], [1], [0, 0, 1, 1], [], []>} : vector<8x64xf32>, vector<64x32xf32>, vector<8x32xf32> -> vector<8x32xf32>
    %c0_16 = arith.constant 0 : index
    %c0_17 = arith.constant 0 : index
    %22 = vector.load %arg8[%c0_16, %c0_17] : memref<1x32xf32, #tpu.memory_space<vmem>>, vector<1x32xf32>
    %23 = vector.broadcast %22 : vector<1x32xf32> to vector<8x32xf32>
    %24 = arith.addf %21, %23 : vector<8x32xf32>
    %25 = math.tanh %24 : vector<8x32xf32>
    %c0_18 = arith.constant 0 : index
    %c0_19 = arith.constant 0 : index
    %26 = vector.load %arg9[%c0_18, %c0_19] : memref<32x128xf32, #tpu.memory_space<vmem>>, vector<32x128xf32>
    %cst_20 = arith.constant dense<0.000000e+00> : vector<8x128xf32>
    %27 = tpu.matmul %25, %26, %cst_20 {dimension_numbers = #tpu.dot_dimension_numbers<[1], [0], [0], [1], [0, 0, 1, 1], [], []>} : vector<8x32xf32>, vector<32x128xf32>, vector<8x128xf32> -> vector<8x128xf32>
    %c0_21 = arith.constant 0 : index
    %c0_22 = arith.constant 0 : index
    %28 = vector.load %arg10[%c0_21, %c0_22] : memref<1x128xf32, #tpu.memory_space<vmem>>, vector<1x128xf32>
    %29 = vector.broadcast %28 : vector<1x128xf32> to vector<8x128xf32>
    %30 = arith.addf %27, %29 : vector<8x128xf32>
    %31 = math.exp %30 : vector<8x128xf32>
    %c0_23 = arith.constant 0 : index
    %c0_24 = arith.constant 0 : index
    %32 = vector.load %arg11[%c0_23, %c0_24] : memref<8x128xf32, #tpu.memory_space<vmem>>, vector<8x128xf32>
    tpu.vector_store %arg11[%c0_23, %c0_24], %31 {strides = array<i32>} : memref<8x128xf32, #tpu.memory_space<vmem>>, vector<8x128xf32>,
    return
  }
  func.func @transform_0(%arg0: i32) -> (i32, i32) {
    %c0_i32 = arith.constant 0 : i32
    %c0_i32_0 = arith.constant 0 : i32
    return %arg0, %c0_i32 : i32, i32
  }
  func.func @transform_1(%arg0: i32) -> (i32, i32) {
    %c0_i32 = arith.constant 0 : i32
    %c0_i32_0 = arith.constant 0 : i32
    return %arg0, %c0_i32 : i32, i32
  }
  func.func @transform_2(%arg0: i32) -> (i32, i32) {
    %c0_i32 = arith.constant 0 : i32
    %c0_i32_0 = arith.constant 0 : i32
    %c0_i32_1 = arith.constant 0 : i32
    return %c0_i32, %c0_i32_0 : i32, i32
  }
  func.func @transform_3(%arg0: i32) -> (i32, i32) {
    %c0_i32 = arith.constant 0 : i32
    %c0_i32_0 = arith.constant 0 : i32
    %c0_i32_1 = arith.constant 0 : i32
    return %c0_i32, %c0_i32_0 : i32, i32
  }
  func.func @transform_4(%arg0: i32) -> (i32, i32) {
    %c0_i32 = arith.constant 0 : i32
    %c0_i32_0 = arith.constant 0 : i32
    %c0_i32_1 = arith.constant 0 : i32
    return %c0_i32, %c0_i32_0 : i32, i32
  }
  func.func @transform_5(%arg0: i32) -> (i32, i32) {
    %c0_i32 = arith.constant 0 : i32
    %c0_i32_0 = arith.constant 0 : i32
    %c0_i32_1 = arith.constant 0 : i32
    return %c0_i32, %c0_i32_0 : i32, i32
  }
  func.func @transform_6(%arg0: i32) -> (i32, i32) {
    %c0_i32 = arith.constant 0 : i32
    %c0_i32_0 = arith.constant 0 : i32
    %c0_i32_1 = arith.constant 0 : i32
    return %c0_i32, %c0_i32_0 : i32, i32
  }
  func.func @transform_7(%arg0: i32) -> (i32, i32) {
    %c0_i32 = arith.constant 0 : i32
    %c0_i32_0 = arith.constant 0 : i32
    %c0_i32_1 = arith.constant 0 : i32
    return %c0_i32, %c0_i32_0 : i32, i32
  }
  func.func @transform_8(%arg0: i32) -> (i32, i32) {
    %c0_i32 = arith.constant 0 : i32
    %c0_i32_0 = arith.constant 0 : i32
    %c0_i32_1 = arith.constant 0 : i32
    return %c0_i32, %c0_i32_0 : i32, i32
  }
  func.func @transform_9(%arg0: i32) -> (i32, i32) {
    %c0_i32 = arith.constant 0 : i32
    %c0_i32_0 = arith.constant 0 : i32
    %c0_i32_1 = arith.constant 0 : i32
    return %c0_i32, %c0_i32_0 : i32, i32
  }
  func.func @transform_10(%arg0: i32) -> (i32, i32) {
    %c0_i32 = arith.constant 0 : i32
    %c0_i32_0 = arith.constant 0 : i32
    return %arg0, %c0_i32 : i32, i32
  }
}

</mosaic_0001>

<bundles_post_ra>
// kernel: tpu_custom_call.1
= control target key start
LH: loop header
LB: loop body
LE: loop exit
PB: predicated region body
PF: predicated region fallthrough
CT: control target
= control target key end

     0   :  { %15 = vsyncpa [#allocation3], 0  ;;  %s822_s0 = inlined_call_operand.hbm [shape: f32[8,32], index: 0, kind: input, shape index: {}]   ;;  %s823_s1 = inlined_call_operand.hbm [shape: f32[8,64], index: 1, kind: input, shape index: {}]   ;;  %s824_s2 = inlined_call_operand.vmem [shape: f32[32,32], index: 2, kind: input, shape index: {}]   ;;  %s825_s3 = inlined_call_operand.vmem [shape: f32[1,32], index: 3, kind: input, shape index: {}]   ;;  %s826_s4 = inlined_call_operand.vmem [shape: f32[32,128], index: 4, kind: input, shape index: {}]   ;;  %s827_s5 = inlined_call_operand.vmem [shape: f32[1,128], index: 5, kind: input, shape index: {}]   ;;  %s828_s6 = inlined_call_operand.vmem [shape: f32[64,32], index: 6, kind: input, shape index: {}]   ;;  %s829_s7 = inlined_call_operand.vmem [shape: f32[1,32], index: 7, kind: input, shape index: {}]   ;;  %s830_s8 = inlined_call_operand.vmem [shape: f32[32,128], index: 8, kind: input, shape index: {}]   ;;  %s831_s9 = inlined_call_operand.vmem [shape: f32[1,128], index: 9, kind: input, shape index: {}]   ;;  %s832_s10 = inlined_call_operand.hbm [shape: f32[8,128], index: 10, kind: output, shape index: {}]  }
   0x1   :  { %16 = vsyncpa [#allocation6], 0 }
   0x2   :  { %17 = vsyncpa [#allocation4], 0  ;;  %s635_s13 = smov [#allocation2]   ;;  %s636_s15 = smov [#allocation5]  }
   0x3   :  { %s24_s14 = sshll.u32 %s635_s13, 4  ;;  %s34_s16 = sshll.u32 %s636_s15, 4  ;;  %s25_s14 = int_to_ptr.vmem [resolvable:$true] %s24_s14  ;;  %s35_s16 = int_to_ptr.vmem [resolvable:$true] %s34_s16 }
   0x4   :  { %s563_s19 = scalar_lea.hbm %s822_s0, 128 }
   0x5   :  { %p564_p0 = scmp.ne.s32.totalorder %s822_s0, %s563_s19  ;;  %p567_p1 = scmp.lt.u32.totalorder %s563_s19, %s822_s0 }
   0x7   :  { %p569_p2 = pnand %p567_p1, %p564_p0 }
   0x9   :  { %572 = shalt.err (!%p569_p2)
}
   0xa   :  { %s573_s24 = scalar_lea.vmem %s25_s14, 128  ;;  %p578_p4 = scmp.lt.s32.totalorder %s25_s14, %s25_s14 }
   0xb   :  { %p574_p3 = scmp.ne.s32.totalorder %s25_s14, %s573_s24  ;;  %p579_p5 = scmp.lt.s32.totalorder %s573_s24, %s573_s24 }
   0xd   :  { %p580_p6 = por %p579_p5, %p578_p4 }
   0xf   :  { %p581_p7 = pnand %p580_p6, %p574_p3 }
  0x11   :  { %584 = shalt.err (!%p581_p7)
}
  0x12   :  { %27 = dma.hbm_to_vmem [thread:$0]  %s822_s0, 128, %s25_s14, [#allocation3]  }
  0x13   :  { %s585_s29 = scalar_lea.hbm %s823_s1, 128 }
  0x14   :  { %p586_p8 = scmp.ne.s32.totalorder %s823_s1, %s585_s29  ;;  %p589_p9 = scmp.lt.u32.totalorder %s585_s29, %s823_s1 }
  0x16   :  { %p591_p10 = pnand %p589_p9, %p586_p8 }
  0x18   :  { %594 = shalt.err (!%p591_p10)
}
  0x19   :  { %s595_s15 = scalar_lea.vmem %s35_s16, 128  ;;  %p600_p12 = scmp.lt.s32.totalorder %s35_s16, %s35_s16 }
  0x1a   :  { %p596_p11 = scmp.ne.s32.totalorder %s35_s16, %s595_s15  ;;  %p601_p13 = scmp.lt.s32.totalorder %s595_s15, %s595_s15 }
  0x1c   :  { %p602_p0 = por %p601_p13, %p600_p12 }
  0x1e   :  { %p603_p1 = pnand %p602_p0, %p596_p11 }
  0x20   :  { %606 = shalt.err (!%p603_p1)
}
  0x21   :  { %37 = dma.hbm_to_vmem [thread:$0]  %s823_s1, 128, %s35_s16, [#allocation6]  }
  0x22   :  { %629 = dma.done.wait [#allocation3], 128  }
  0x23   :  { %630 = vsyncadd [#allocation3], 4294967168 }
  0x24   :  { %631 = dma.done.wait [#allocation6], 128  }
  0x25   :  { %632 = vsyncadd [#allocation6], 4294967168  ;;  %v637_v0 = vmov 0.0|0.0   ;;  %vm638_vm0 = vmmov 0   ;;  %v639_v1 = vmov 0.0   ;;  %v61_v2 = vld [vmem:[%s824_s2] sm:$0xff] }
  0x26   :  { %518 = vmatprep.subr.bf16.mxu0 %v637_v0  ;;  %474 = vmatprep.mubr.msk.f32.mxu0 %vm638_vm0, %v639_v1  ;;  %v62_v3 = vld [vmem:[%s824_s2 + $0x8] sm:$0xff]  ;;  %v63_v4 = vld [vmem:[%s824_s2 + $0x10] sm:$0xff]  ;;  %v64_v6 = vld [vmem:[%s824_s2 + $0x18] sm:$0xff]  ;;  %vm72_vm1 = vcmask 261120   ;;  %s640_s26 = smov 64   ;;  %vm256_vm2 = vcmask 523264  }
  0x27   :  { %524 = vmatprep.subr.bf16.mxu1 %v637_v0  ;;  %485 = vmatprep.mubr.msk.f32.mxu1 %vm638_vm0, %v639_v1  ;;  %v519_v5 = vpack.c.bf16 %v62_v3, %v61_v2  ;;  %v522_v7 = vpack.c.bf16 %v64_v6, %v63_v4  ;;  %v60_v8 = vld [vmem:[#allocation2] sm:$0xff]  ;;  %v148_v10 = vld [vmem:[%s826_s4 + $0x8] sm:$0xff]  ;;  %v149_v11 = vld [vmem:[%s826_s4 + $0x10] sm:$0xff] }
  0x28   :  { %v147_v9 = vld [vmem:[%s826_s4] sm:$0xff]  ;;  %v150_v13 = vld [vmem:[%s826_s4 + $0x18] sm:$0xff]  ;;  %v242_v21 = vld [vmem:[%s828_s6 + $0x8] sm:$0xff] }
  0x29   :  { %520 = vmatpush3.bf16.msra.mxu0 %v519_v5  ;;  %v525_v12 = vpack.c.bf16 %v148_v10, %v147_v9  ;;  %v528_v14 = vpack.c.bf16 %v150_v13, %v149_v11  ;;  %v434_v15 = vld [vmem:[%s825_s3] ss:$0 sm:$0xff]  ;;  %v243_v22 = vld [vmem:[%s828_s6 + $0x10] sm:$0xff]  ;;  %v244_v24 = vld [vmem:[%s828_s6 + $0x18] sm:$0xff] }
  0x2a   :  { %521 = vmatprep.subr.bf16.mxu0 %v637_v0  ;;  %v241_v20 = vld [vmem:[%s828_s6] sm:$0xff]  ;;  %v534_v25 = vpack.c.bf16 %v244_v24, %v243_v22  ;;  %v246_v27 = vld [vmem:[%s828_s6 + $0x28] sm:$0xff]  ;;  %v247_v34 = vld [vmem:[%s828_s6 + $0x30] sm:$0xff] }
  0x2b   :  { %526 = vmatpush3.bf16.msra.mxu1 %v525_v12  ;;  %v531_v23 = vpack.c.bf16 %v242_v21, %v241_v20  ;;  %v245_v26 = vld [vmem:[%s828_s6 + $0x20] sm:$0xff]  ;;  %v248_v35 = vld [vmem:[%s828_s6 + $0x38] sm:$0xff]  ;;  %v231_v39 = vld [vmem:[#allocation5] sm:$0xff] }
  0x2c   :  { %527 = vmatprep.subr.bf16.mxu1 %v637_v0  ;;  %v537_v28 = vpack.c.bf16 %v246_v27, %v245_v26  ;;  %v436_v29 = vld [vmem:[%s827_s5] ss:$0 sm:$0xff]  ;;  %v540_v36 = vpack.c.bf16 %v248_v35, %v247_v34  ;;  %v332_v44 = vld [vmem:[%s830_s8 + $0x8] sm:$0xff]  ;;  %v333_v45 = vld [vmem:[%s830_s8 + $0x10] sm:$0xff] }
  0x2d   :  { %523 = vmatpush3.bf16.msra.mxu0 %v522_v7  ;;  %v331_v43 = vld [vmem:[%s830_s8] sm:$0xff]  ;;  %v334_v47 = vld [vmem:[%s830_s8 + $0x18] sm:$0xff]  ;;  %s641_s8 = smov [#allocation7]  }
  0x2e   :  { %530 = vmatprep.subr.bf16.mxu0 %v637_v0  ;;  %v543_v46 = vpack.c.bf16 %v332_v44, %v331_v43  ;;  %v546_v48 = vpack.c.bf16 %v334_v47, %v333_v45  ;;  %v438_v49 = vld [vmem:[%s829_s7] ss:$0 sm:$0xff]  ;;  %s424_s0 = sshll.u32 %s641_s8, 4  ;;  %s425_s0 = int_to_ptr.vmem [resolvable:$true] %s424_s0 }
  0x2f   :  { %529 = vmatpush3.bf16.msra.mxu1 %v528_v14  ;;  %v440_v54 = vld [vmem:[%s831_s9] ss:$0 sm:$0xff]  ;;  %s607_s7 = scalar_lea.vmem %s425_s0, 128  ;;  %p612_p3 = scmp.lt.s32.totalorder %s425_s0, %s425_s0 }
  0x30   :  { %475 = vmatmul.mubr.msk.f32.vlgmr.msra.gmra.mrb[0].mxu0 %vm72_vm1, %v60_v8  ;;  %542 = vmatprep.subr.bf16.mxu1 %v637_v0  ;;  %p608_p2 = scmp.ne.s32.totalorder %s425_s0, %s607_s7  ;;  %p613_p4 = scmp.lt.s32.totalorder %s607_s7, %s607_s7 }
  0x31   :  { %504 = vmatprep.mubr.msk.f32.mxu0 %vm638_vm0, %v639_v1  ;;  %532 = vmatpush3.bf16.msra.mxu0 %v531_v23 }
  0x32   :  { %533 = vmatprep.subr.bf16.mxu0 %v637_v0  ;;  %p614_p5 = por %p613_p4, %p612_p3 }
  0x34   :  { %p615_p6 = pnand %p614_p5, %p608_p2 }
  0x35   :  { %535 = vmatpush3.bf16.msra.mxu0 %v534_v25 }
  0x36   :  { %536 = vmatprep.subr.bf16.mxu0 %v637_v0 }
  0x39   :  { %538 = vmatpush3.bf16.msra.mxu0 %v537_v28 }
  0x3a   :  { %539 = vmatprep.subr.bf16.mxu0 %v637_v0 }
  0x3d   :  { %541 = vmatpush3.bf16.msra.mxu0 %v540_v36 }
 0x103   :  { %v142_v16 = vpop.f32.mrb[0].mxu0 }
 0x104   :  { %v143_v17 = vadd.f32 %v434_v15, %v142_v16  ;;  %v476_v18 = vpop.f32.mrb[1].mxu0 }
 0x106   :  { %555 = vtanh.f32 %v143_v17 }
 0x110   :  { %v556_v19 = vpop.eup %555 }
 0x111   :  { %486 = vmatmul.mubr.msk.f32.vlgmr.msra.gmra.mrb[0].mxu1 %vm72_vm1, %v556_v19 }
 0x112   :  { %515 = vmatprep.mubr.msk.f32.mxu1 %vm638_vm0, %v639_v1  ;;  %544 = vmatpush3.bf16.msra.mxu1 %v543_v46 }
 0x113   :  { %545 = vmatprep.subr.bf16.mxu1 %v637_v0 }
 0x116   :  { %547 = vmatpush3.bf16.msra.mxu1 %v546_v48 }
 0x1e4   :  { %v227_v30 = vpop.f32.mrb[0].mxu1 }
 0x1e5   :  { %v228_v31 = vadd.f32 %v436_v29, %v227_v30  ;;  %v487_v32 = vpop.f32.mrb[1].mxu1 }
 0x1e7   :  { %v232_v33 = vmul.f32 0.5, %v228_v31 }
 0x1e9   :  { %v233_v37 = vmul.f32 1.442695, %v232_v33 }
 0x1eb   :  { %557 = vpow2.f32 %v233_v37 }
 0x1f5   :  { %v558_v38 = vpop.eup %557 }
 0x1f6   :  { %236 = vrot.lane.b32.xlu0 %v558_v38, %s640_s26 }
 0x268   :  { %v237_v40 = vpop.permute.xlu0 %236 }
 0x269   :  { %v239_v41 = vmul.f32 %v237_v40, %v231_v39 }
 0x26b   :  { %v240_v42 = vadd.f32 %v239_v41, %v228_v31 }
 0x26d   :  { %505 = vmatmul.mubr.msk.f32.vlgmr.msra.gmra.mrb[2].mxu0 %vm256_vm2, %v240_v42 }
 0x340   :  { %v326_v50 = vpop.f32.mrb[2].mxu0 }
 0x341   :  { %v327_v51 = vadd.f32 %v438_v49, %v326_v50  ;;  %v506_v52 = vpop.f32.mrb[3].mxu0 }
 0x343   :  { %559 = vtanh.f32 %v327_v51 }
 0x34d   :  { %v560_v53 = vpop.eup %559 }
 0x34e   :  { %516 = vmatmul.mubr.msk.f32.vlgmr.msra.gmra.mrb[2].mxu1 %vm72_vm1, %v560_v53 }
 0x421   :  { %v411_v55 = vpop.f32.mrb[2].mxu1 }
 0x422   :  { %v412_v56 = vadd.f32 %v440_v54, %v411_v55  ;;  %v517_v57 = vpop.f32.mrb[3].mxu1 }
 0x424   :  { %v415_v58 = vmul.f32 1.442695, %v412_v56 }
 0x426   :  { %561 = vpow2.f32 %v415_v58 }
 0x430   :  { %v562_v59 = vpop.eup %561 }
 0x431   :  { %417 = vst [vmem:[#allocation7] sm:$0xff] %v562_v59 }
 0x432   :  { %618 = shalt.err (!%p615_p6)
}
 0x433   :  { %s619_s9 = scalar_lea.hbm %s832_s10, 128 }
 0x434   :  { %p620_p7 = scmp.ne.s32.totalorder %s832_s10, %s619_s9  ;;  %p623_p8 = scmp.lt.u32.totalorder %s619_s9, %s832_s10 }
 0x436   :  { %p625_p9 = pnand %p623_p8, %p620_p7 }
 0x438   :  { %628 = shalt.err (!%p625_p9)
}
 0x439   :  { %427 = dma.vmem_to_hbm [thread:$0]  %s425_s0, 128, %s832_s10, [#allocation4]  }
 0x43a   :  { %633 = dma.done.wait [#allocation4], 128  }
 0x43b   :  { %634 = vsyncadd [#allocation4], 4294967168 }
 0x43c   :  { %431 = vsyncpa [#allocation3], 1 }
 0x43d   :  { %432 = vsyncpa [#allocation6], 1 }
 0x43e   :  { %433 = vsyncpa [#allocation4], 1 }

</bundles_post_ra>
